<compile_context>
chip_gen: v5e
topology: v5e:2x2
jax: 0.10.0
libtpu: 0.0.40
codegen_flags: <defaults>
</compile_context>

<pallas_src>
import functools
import math

import jax
import jax.numpy as jnp
from jax.experimental import pallas as pl
from jax.experimental.pallas import tpu as pltpu


def _label_smooth_kernel(x_ref, tgt_ref, loss_ref, td_ref, *,
                         smooth, class_num, n_total):
    i = pl.program_id(0)

    @pl.when(i == 0)
    def _init():
        loss_ref[...] = jnp.zeros_like(loss_ref)

    x = x_ref[...].astype(jnp.float32)        # [tn, C]  (log-probabilities)
    tgt = tgt_ref[...]                        # [tn, 1]  int32 class labels

    tn, c = x.shape
    on_val = 1.0 - smooth
    off_val = smooth / (class_num - 1)
    # xlogy(t, t) with the 0*log(0) := 0 convention (matches torch kl_div).
    xlogy_on = on_val * math.log(on_val) if on_val > 0.0 else 0.0
    xlogy_off = off_val * math.log(off_val) if off_val > 0.0 else 0.0

    class_idx = jax.lax.broadcasted_iota(jnp.int32, (tn, c), 1)
    onehot = class_idx == tgt                 # [tn, C] bool (scatter_ equivalent)

    td = jnp.where(onehot, jnp.float32(on_val), jnp.float32(off_val))
    td_ref[...] = td.astype(td_ref.dtype)     # module's self.true_dist

    # KLDivLoss pointwise: t * (log t - x), defined as 0 wherever t == 0.
    xlogy = jnp.where(onehot, jnp.float32(xlogy_on), jnp.float32(xlogy_off))
    pointwise = jnp.where(td > 0.0, xlogy - td * x, jnp.float32(0.0))

    loss_ref[...] += jnp.sum(pointwise, keepdims=True)   # (1, 1) partial sum

    @pl.when(i == pl.num_programs(0) - 1)
    def _finalize():
        # reduction='mean' -> divide by total element count N*C
        loss_ref[...] = loss_ref[...] * jnp.float32(1.0 / n_total)


def label_smooth_loss(x, target, *, class_num, smooth=0.0, block_rows=8):
    """x: [N, class_num] log-probs; target: [N] int labels.

    Returns (loss_scalar, true_dist[N, class_num])."""
    n, c = x.shape
    assert c == class_num, "X.size(1) must equal class_num"
    assert n % block_rows == 0, "toy wrapper assumes N is a multiple of block_rows"

    tgt = target.astype(jnp.int32).reshape(n, 1)
    kernel = functools.partial(_label_smooth_kernel, smooth=float(smooth),
                               class_num=int(class_num), n_total=n * c)
    itemsize = jnp.dtype(x.dtype).itemsize

    loss, true_dist = pl.pallas_call(
        kernel,
        out_shape=(
            jax.ShapeDtypeStruct((1, 1), jnp.float32),     # scalar loss
            jax.ShapeDtypeStruct((n, c), x.dtype),          # true_dist
        ),
        grid=(n // block_rows,),
        in_specs=[
            pl.BlockSpec((block_rows, c), lambda i: (i, 0)),   # X row tile
            pl.BlockSpec((block_rows, 1), lambda i: (i, 0)),   # labels row tile
        ],
        out_specs=(
            pl.BlockSpec((1, 1), lambda i: (0, 0)),            # resident accumulator
            pl.BlockSpec((block_rows, c), lambda i: (i, 0)),   # lane-dense true_dist
        ),
        compiler_params=pltpu.CompilerParams(
            dimension_semantics=("arbitrary",),     # reduction axis
            vmem_limit_bytes=32 * 1024 * 1024,      # safe on v5e/v6e/v7x
        ),
        cost_estimate=pl.CostEstimate(
            flops=6 * n * c,
            transcendentals=0,
            bytes_accessed=2 * n * c * itemsize + n * 4 + 4,
        ),
    )(x, tgt)

    return loss[0, 0], true_dist


if __name__ == "__main__":
    key = jax.random.PRNGKey(0)
    n, class_num = 16, 128         # batch of 16 rows, 128 classes (lane-dense)
    smooth = 0.1

    k1, k2 = jax.random.split(key)
    logits = jax.random.normal(k1, (n, class_num), jnp.float32)
    x = jax.nn.log_softmax(logits, axis=-1)   # KLDivLoss expects log-probs as input
    target = jax.random.randint(k2, (n,), 0, class_num, jnp.int32)

    loss, true_dist = label_smooth_loss(x, target, class_num=class_num, smooth=smooth)
    jax.block_until_ready((loss, true_dist))

    # Pure-JAX reference of the PyTorch forward (clone/fill_/scatter_ + KLDivLoss('mean')).
    def ref(x, target, class_num, smooth):
        off = smooth / (class_num - 1)
        td = jnp.full(x.shape, off, x.dtype)
        td = td.at[jnp.arange(x.shape[0]), target].set(1.0 - smooth)
        xlogy = jnp.where(td > 0, td * jnp.log(jnp.where(td > 0, td, 1.0)), 0.0)
        pointwise = jnp.where(td > 0, xlogy - td * x, 0.0)
        return jnp.mean(pointwise), td

    loss_ref, td_ref = ref(x, target, class_num, smooth)
    assert jnp.allclose(loss, loss_ref, rtol=1e-5, atol=1e-6), (loss, loss_ref)
    assert jnp.allclose(true_dist, td_ref, rtol=1e-6, atol=1e-6)

    # smooth=0.0 edge case: true_dist has exact zeros -> 0*log(0) path must be 0.
    loss0, td0 = label_smooth_loss(x, target, class_num=class_num, smooth=0.0)
    jax.block_until_ready((loss0, td0))
    loss0_ref, td0_ref = ref(x, target, class_num, 0.0)
    assert jnp.allclose(loss0, loss0_ref, rtol=1e-5, atol=1e-6), (loss0, loss0_ref)
    assert jnp.allclose(td0, td0_ref)

    print("KERNEL_OK")
</pallas_src>

<mosaic_0001>
module attributes {stable_mosaic.version = 11 : i64} {
  func.func @_label_smooth_kernel(%arg0: i32, %arg1: memref<8x128xf32, #tpu.memory_space<vmem>>, %arg2: memref<8x1xi32, #tpu.memory_space<vmem>>, %arg3: memref<1x1xf32, #tpu.memory_space<vmem>>, %arg4: memref<8x128xf32, #tpu.memory_space<vmem>>) attributes {dimension_semantics = [#tpu.dimension_semantics<arbitrary>], iteration_bounds = array<i64: 2>, scalar_prefetch = 0 : i64, scratch_operands = 0 : i64, tpu.core_type = #tpu.core_type<tc>, window_params = [{transform_indices = @transform_0, window_bounds = array<i64: 8, 128>}, {transform_indices = @transform_1, window_bounds = array<i64: 8, 1>}, {pipeline_mode = #tpu.pipeline_mode<synchronous>, transform_indices = @transform_2, window_bounds = array<i64: 1, 1>}, {transform_indices = @transform_3, window_bounds = array<i64: 8, 128>}]} {
    %c0_i32 = arith.constant 0 : i32
    %0 = arith.cmpi eq, %arg0, %c0_i32 : i32
    %1 = arith.extui %0 : i1 to i32
    %c0_i32_0 = arith.constant 0 : i32
    %2 = arith.cmpi ne, %1, %c0_i32_0 : i32
    scf.if %2 {
      %cst_17 = arith.constant 0.000000e+00 : f32
      %32 = vector.broadcast %cst_17 : f32 to vector<1x1xf32>
      %c0_18 = arith.constant 0 : index
      %c0_19 = arith.constant 0 : index
      %33 = vector.load %arg3[%c0_18, %c0_19] : memref<1x1xf32, #tpu.memory_space<vmem>>, vector<1x1xf32>
      tpu.vector_store %arg3[%c0_18, %c0_19], %32 {strides = array<i32>} : memref<1x1xf32, #tpu.memory_space<vmem>>, vector<1x1xf32>,
    } else {
    }
    %c0 = arith.constant 0 : index
    %c0_1 = arith.constant 0 : index
    %3 = vector.load %arg1[%c0, %c0_1] : memref<8x128xf32, #tpu.memory_space<vmem>>, vector<8x128xf32>
    %c0_2 = arith.constant 0 : index
    %c0_3 = arith.constant 0 : index
    %4 = vector.load %arg2[%c0_2, %c0_3] : memref<8x1xi32, #tpu.memory_space<vmem>>, vector<8x1xi32>
    %5 = tpu.iota {dimensions = array<i32: 1>} : vector<8x128xi32>
    %6 = vector.broadcast %4 : vector<8x1xi32> to vector<8x128xi32>
    %7 = arith.cmpi eq, %5, %6 : vector<8x128xi32>
    %cst = arith.constant 0.899999976 : f32
    %cst_4 = arith.constant 7.87401571E-4 : f32
    %8 = vector.broadcast %cst : f32 to vector<8x128xf32>
    %9 = vector.broadcast %cst_4 : f32 to vector<8x128xf32>
    %10 = arith.select %7, %8, %9 : vector<8x128xi1>, vector<8x128xf32>
    %c0_5 = arith.constant 0 : index
    %c0_6 = arith.constant 0 : index
    %11 = vector.load %arg4[%c0_5, %c0_6] : memref<8x128xf32, #tpu.memory_space<vmem>>, vector<8x128xf32>
    tpu.vector_store %arg4[%c0_5, %c0_6], %10 {strides = array<i32>} : memref<8x128xf32, #tpu.memory_space<vmem>>, vector<8x128xf32>,
    %cst_7 = arith.constant -0.0948244631 : f32
    %cst_8 = arith.constant -0.00562737975 : f32
    %12 = vector.broadcast %cst_7 : f32 to vector<8x128xf32>
    %13 = vector.broadcast %cst_8 : f32 to vector<8x128xf32>
    %14 = arith.select %7, %12, %13 : vector<8x128xi1>, vector<8x128xf32>
    %cst_9 = arith.constant 0.000000e+00 : f32
    %15 = vector.broadcast %cst_9 : f32 to vector<8x128xf32>
    %16 = arith.cmpf ogt, %10, %15 : vector<8x128xf32>
    %17 = arith.mulf %10, %3 : vector<8x128xf32>
    %18 = arith.subf %14, %17 : vector<8x128xf32>
    %cst_10 = arith.constant 0.000000e+00 : f32
    %19 = vector.broadcast %cst_10 : f32 to vector<8x128xf32>
    %20 = arith.select %16, %18, %19 : vector<8x128xi1>, vector<8x128xf32>
    %c0_11 = arith.constant 0 : index
    %c0_12 = arith.constant 0 : index
    %21 = vector.load %arg3[%c0_11, %c0_12] : memref<1x1xf32, #tpu.memory_space<vmem>>, vector<1x1xf32>
    %22 = vector.shape_cast %20 : vector<8x128xf32> to vector<1x8x128xf32>
    %cst_13 = arith.constant dense<0.000000e+00> : vector<1xf32>
    %23 = vector.multi_reduction <add>, %22, %cst_13 [1, 2] : vector<1x8x128xf32> to vector<1xf32>
    %24 = vector.shape_cast %23 : vector<1xf32> to vector<1x1x1xf32>
    %25 = vector.extract %24[0, 0, 0] : f32 from vector<1x1x1xf32>
    %26 = vector.broadcast %25 : f32 to vector<1x1xf32>
    %27 = arith.addf %21, %26 : vector<1x1xf32>
    %c0_14 = arith.constant 0 : index
    %c0_15 = arith.constant 0 : index
    %28 = vector.load %arg3[%c0_14, %c0_15] : memref<1x1xf32, #tpu.memory_space<vmem>>, vector<1x1xf32>
    tpu.vector_store %arg3[%c0_14, %c0_15], %27 {strides = array<i32>} : memref<1x1xf32, #tpu.memory_space<vmem>>, vector<1x1xf32>,
    %c1_i32 = arith.constant 1 : i32
    %29 = arith.cmpi eq, %arg0, %c1_i32 : i32
    %30 = arith.extui %29 : i1 to i32
    %c0_i32_16 = arith.constant 0 : i32
    %31 = arith.cmpi ne, %30, %c0_i32_16 : i32
    scf.if %31 {
      %c0_17 = arith.constant 0 : index
      %c0_18 = arith.constant 0 : index
      %32 = vector.load %arg3[%c0_17, %c0_18] : memref<1x1xf32, #tpu.memory_space<vmem>>, vector<1x1xf32>
      %cst_19 = arith.constant 4.8828125E-4 : f32
      %33 = vector.broadcast %cst_19 : f32 to vector<1x1xf32>
      %34 = arith.mulf %32, %33 : vector<1x1xf32>
      %c0_20 = arith.constant 0 : index
      %c0_21 = arith.constant 0 : index
      %35 = vector.load %arg3[%c0_20, %c0_21] : memref<1x1xf32, #tpu.memory_space<vmem>>, vector<1x1xf32>
      tpu.vector_store %arg3[%c0_20, %c0_21], %34 {strides = array<i32>} : memref<1x1xf32, #tpu.memory_space<vmem>>, vector<1x1xf32>,
    } else {
    }
    return
  }
  func.func @transform_0(%arg0: i32) -> (i32, i32) {
    %c0_i32 = arith.constant 0 : i32
    %c0_i32_0 = arith.constant 0 : i32
    return %arg0, %c0_i32 : i32, i32
  }
  func.func @transform_1(%arg0: i32) -> (i32, i32) {
    %c0_i32 = arith.constant 0 : i32
    %c0_i32_0 = arith.constant 0 : i32
    return %arg0, %c0_i32 : i32, i32
  }
  func.func @transform_2(%arg0: i32) -> (i32, i32) {
    %c0_i32 = arith.constant 0 : i32
    %c0_i32_0 = arith.constant 0 : i32
    %c0_i32_1 = arith.constant 0 : i32
    return %c0_i32, %c0_i32_0 : i32, i32
  }
  func.func @transform_3(%arg0: i32) -> (i32, i32) {
    %c0_i32 = arith.constant 0 : i32
    %c0_i32_0 = arith.constant 0 : i32
    return %arg0, %c0_i32 : i32, i32
  }
}

</mosaic_0001>

<bundles_post_ra>
// kernel: tpu_custom_call.1
= control target key start
LH: loop header
LB: loop body
LE: loop exit
PB: predicated region body
PF: predicated region fallthrough
CT: control target
= control target key end

     0   :  { %9 = vsyncpa [#allocation3], 0  ;;  %s638_s0 = inlined_call_operand.vmem [shape: f32[16,128], index: 0, kind: input, shape index: {}]   ;;  %s639_s1 = inlined_call_operand.vmem [shape: s32[16,1], index: 1, kind: input, shape index: {}]   ;;  %s640_s2 = inlined_call_operand.hbm [shape: f32[1,1], index: 2, kind: output, shape index: {0}]   ;;  %s641_s3 = inlined_call_operand.hbm [shape: f32[16,128], index: 3, kind: output, shape index: {1}]  }
   0x1   :  { %10 = vsyncpa [#allocation5], 0 }
   0x2   :  { %12 = vsyncpa [#allocation5 + $0x1], 0  ;;  %s526_s12 = smov 0   ;;  %s528_s13 = smov 0  }
   0x3   :  { %s530_s14 = smov 0   ;;  %s532_s15 = smov 0  }
   0x4 LB: > { %s547_s16 = sadd.s32 4294967295, %s499_s15   ;;  %s337_s17 = sadd.s32 4294967294, %s499_s15   ;;  %s499_s15 = sphi %s532_s15, %s647_s15   ;;  %s495_s14 = sphi %s530_s14, %s646_s14   ;;  %s491_s13 = sphi %s528_s13, %s645_s13   ;;  %s487_s12 = sphi %s526_s12, %s644_s12  }
   0x5   : > { %s551_s18 = sadd.s32 1, %s499_s15   ;;  %s98_s19 = sadd.s32 1, %s495_s14 }
   0x6   : > { %s95_s20 = ssub.s32 %s499_s15, %s551_s18  ;;  %p108_p0 = scmp.ne.s32.totalorder %s495_s14, %s491_s13 }
   0x7   : > { %p96_p1 = scmp.eq.s32.totalorder %s95_s20, 0  ;;  %p109_p2 = scmp.eq.s32.totalorder %s547_s16, 1 }
   0x8   : > { %p114_p3 = scmp.ne.s32.totalorder %s491_s13, %s487_s12  ;;  %p115_p4 = scmp.eq.s32.totalorder %s337_s17, 1 }
   0x9   : > { %s562_s21 = scalar_select %p96_p1, %s495_s14, %s98_s19  }
   0xa   : > { %p566_p5 = por %p109_p2, %p108_p0  ;;  %p570_p6 = por %p115_p4, %p114_p3 }
   0xb   : > { %p340_p7 = scmp.ge.s32.totalorder %s499_s15, 1  ;;  %p147_p8 = scmp.lt.s32.totalorder %s499_s15, 3 }
   0xd   : > { %p148_p9 = pnand %p340_p7, %p147_p8 }
   0xe   : > { %s171_s24 = sand.u32 (!%p148_p9), 1, %s491_s13   ;;  %p174_p10 = scmp.lt.s32.totalorder (!%p148_p9), %s547_s16, 1 }
   0xf   : > { %151 = sbr.rel (%p148_p9) target bundleno = 363 (0x16b), region = 28  ;;  %s580_s25 = sshll.u32 (!%p148_p9), %s171_s24, 3 }
  0x10   : > { %s173_s7 = scalar_lea.vmem (!%p148_p9), [#allocation4], %s580_s25  ;;  %p344_p11 = scmp.ne.s32.totalorder (!%p148_p9), %s547_s16, 0 }
  0x14   : > { %s175_s26 = scalar_select %p174_p10, %s547_s16, 1 }
  0x15   : > { %185 = sbr.rel (%p344_p11) target bundleno = 28 (0x1c), region = 32 }
  0x16   : > { %s342_s27 = sshll.u32 %s175_s26, 3 }
  0x17   : > { %s177_s30 = scalar_lea.vmem %s638_s0, %s342_s27  ;;  %s181_s6 = scalar_lea.vmem %s639_s1, %s342_s27 }
  0x1a   : > { %vm186_vm0 = vcmask 0   ;;  %v501_v0 = vmov 0.0  }
  0x1b   : > { %187 = vst.msk [vmem:[#allocation2] sm:$0x1] %vm186_vm0, %v501_v0 }
  0x1c PF: > { %v189_v1 = vld [vmem:[%s181_s6] sm:$0xff]  ;;  %v502_v2 = vmov 0   ;;  %v190_v3 = vlaneseq  ;;  %v503_v7 = vmov 0.0007874016   ;;  %v504_v10 = vmov -0.0056273798  }
  0x1d   : > { %404 = vset.pattern.permute.xlu0 %v502_v2  ;;  %v188_v6 = vld [vmem:[%s177_s30] sm:$0xff]  ;;  %vm215_vm3 = vcmask 0   ;;  %p345_p12 = scmp.ne.s32.totalorder %s547_s16, 1 }
  0x1e   : > { %193 = vperm.xlu0 %404, %v189_v1   ;;  %v191_v4 = vand.u32 127, %v190_v3 }
  0x22   : > { %v203_v21 = vld [vmem:[#allocation2] sm:$0x1] }
  0x90   : > { %v194_v5 = vpop.permute.xlu0 %193 }
  0x91   : > { %vm195_vm1 = vcmp.eq.s32.totalorder %v191_v4, %v194_v5 }
  0x92   : > { %v196_v8 = vsel %vm195_vm1, 0.9, %v503_v7  ;;  %v198_v11 = vsel %vm195_vm1, -0.09482446, %v504_v10 }
  0x93   : > { %197 = vst [vmem:[%s173_s7] sm:$0xff] %v196_v8  ;;  %v200_v9 = vmul.f32 %v196_v8, %v188_v6  ;;  %vm199_vm2 = vcmp.gt.f32.partialorder %v196_v8, 0.0 }
  0x95   : > { %v201_v12 = vsub.f32 %v198_v11, %v200_v9 }
  0x97   : > { %v202_v13 = vsel %vm199_vm2, %v201_v12, 0.0 }
  0x98   : > { %204 = vadd.xlane.f32.xlu0 %v202_v13 }
 0x10b   : > { %v205_v14 = vpop.xlane.xlu0 %204 }
 0x10c   : > { %v206_v15 = vrot.slane %v205_v14, 4 }
 0x10e   : > { %v207_v16 = vadd.f32 %v206_v15, %v205_v14 }
 0x110   : > { %v208_v17 = vrot.slane %v207_v16, 2 }
 0x112   : > { %v209_v18 = vadd.f32 %v208_v17, %v207_v16 }
 0x114   : > { %v210_v19 = vrot.slane %v209_v18, 1 }
 0x116   : > { %v211_v20 = vadd.f32 %v210_v19, %v209_v18 }
 0x118   : > { %352 = vpush %v211_v20 }
 0x149   : > { %s353_s8 = spop %352  ;;  %220 = sbr.rel (%p345_p12) target bundleno = 344 (0x158), region = 36 }
 0x14a   : > { %v213_v22 = vstv %s353_s8 }
 0x14b   : > { %v214_v23 = vadd.f32 %v213_v22, %v203_v21 }
 0x14d   : > { %216 = vst.msk [vmem:[#allocation2] sm:$0x1] %vm215_vm3, %v214_v23 }
 0x154   : > { %v221_v24 = vld [vmem:[#allocation2] sm:$0x1] }
 0x155   : > { %v222_v25 = vmul.f32 0.00048828125, %v221_v24 }
 0x157   : > { %223 = vst.msk [vmem:[#allocation2] sm:$0x1] %vm215_vm3, %v222_v25 }
 0x158 PF: > { %s237_s11 = sshll.u32 %s640_s2, 4  ;;  %s505_s17 = smov [#allocation2]   ;;  %s238_s11 = int_to_ptr.hbm [resolvable:$true] %s237_s11 }
 0x159   : > { %s235_s19 = sshll.u32 %s505_s17, 4  ;;  %s348_s20 = sshll.u32 %s547_s16, 3  ;;  %s236_s19 = int_to_ptr.vmem [resolvable:$true] %s235_s19 }
 0x15a   : > { %355 = dma.vmem_to_hbm [thread:$0]  (%p109_p2), %s236_s19, 16, %s238_s11, [#allocation3]  }
 0x15b   : > { %s249_s26 = sshll.u32 %s173_s7, 4  ;;  %s247_s29 = scalar_lea.hbm %s641_s3, %s348_s20  ;;  %s250_s26 = int_to_ptr.vmem [resolvable:$true] %s249_s26 }
 0x15c   : > { %s251_s30 = sshll.u32 %s247_s29, 4  ;;  %s225_s4 = scalar_lea.sflag [#allocation5], %s171_s24  ;;  %s252_s30 = int_to_ptr.hbm [resolvable:$true] %s251_s30 }
 0x15d   : > { %s447_s5 = sshra.s32 %s252_s30, 4  ;;  %s453_s25 = scalar_lea.hbm %s641_s3, 16  ;;  %s448_s5 = int_to_ptr.hbm [resolvable:$true] %s447_s5 }
 0x15e   : > { %s449_s6 = scalar_lea.hbm %s448_s5, 8  ;;  %p454_p3 = scmp.lt.s32.totalorder %s448_s5, %s641_s3 }
 0x15f   : > { %p450_p13 = scmp.ne.s32.totalorder %s448_s5, %s449_s6  ;;  %p455_p4 = scmp.lt.s32.totalorder %s453_s25, %s449_s6 }
 0x161   : > { %p451_p0 = pnand %p450_p13, %p566_p5  ;;  %p456_p7 = por %p455_p4, %p454_p3 }
 0x163   : > { %p452_p1 = pneg %p451_p0 }
 0x165   : > { %p457_p8 = pnand %p456_p7, %p452_p1 }
 0x167   : > { %460 = shalt.err (!%p457_p8)
}
 0x168   : > { %356 = dma.vmem_to_hbm [thread:$0]  (%p566_p5), %s250_s26, 128, %s252_s30, %s225_s4  }
 0x169   : > { %478 = dma.done.wait (%p109_p2), [#allocation3], 16  }
 0x16a   : > { %480 = vsyncadd (%p109_p2), [#allocation3], 4294967280 }
 0x16b PF: > { %p366_p9 = scmp.ge.s32.totalorder %s499_s15, 2  ;;  %s268_s24 = sand.u32 1, %s487_s12  }
 0x16c   : > { %s269_s11 = scalar_lea.sflag [#allocation5], %s268_s24 }
 0x16d   : > { %p361_p10 = pnand %p366_p9, %p570_p6 }
 0x16f   : > { %p362_p11 = pneg %p361_p10 }
 0x171   : > { %482 = dma.done.wait (%p362_p11), %s269_s11, 128  }
 0x172   : > { %484 = vsyncadd (%p362_p11), %s269_s11, 4294967168  ;;  %p15_p5 = scmp.ge.s32.totalorder %s551_s18, 4   ;;  %s644_s12 = smov %s491_s13 }
 0x173   : > { %s645_s13 = smov %s495_s14  ;;  %s646_s14 = smov %s562_s21 }
 0x174   : > { %s647_s15 = smov %s551_s18  ;;  %17 = sbr.rel (!%p15_p5) target bundleno = 4 (0x4), region = 83 }
 0x179   :  { %275 = vsyncpa [#allocation3], 1 }
 0x17a   :  { %277 = vsyncpa [#allocation3 + $0x1], 1 }
 0x17b   :  { %278 = vsyncpa [#allocation5], 1 }
 0x17c   :  { %280 = vsyncpa [#allocation5 + $0x1], 1 }

</bundles_post_ra>
